<compile_context>
chip_gen: v7x
topology: tpu7x:2x2x1
jax: 0.10.0
libtpu: 0.0.40
codegen_flags: <defaults>
</compile_context>

<pallas_src>
import jax
import jax.numpy as jnp
from jax.experimental import pallas as pl
from jax.experimental.pallas import tpu as pltpu

INPUT_DIM = 17
_LANE = 128


def _round_up(n: int, m: int) -> int:
    return ((n + m - 1) // m) * m


def _vmem_capacity_bytes():
    try:
        info = pltpu.get_tpu_info()
        cap = getattr(info, "vmem_capacity_bytes", None)
        return int(cap) if cap else None
    except Exception:
        return None


def _tile_policy(bytes_per_row: int):
    """Per-generation row-tile cap + scoped-VMEM limit.

    bytes_per_row = VMEM bytes one batch element occupies inside an input
    buffer after lane/sublane padding.  Returns (max_rows, vmem_limit_bytes).
    """
    vmem = _vmem_capacity_bytes()
    if vmem is not None and vmem >= 100 * 1024 * 1024:
        # v5e / v6e: 128 MiB physical VMEM.  Allow 16 MiB per input buffer
        # (32 MiB double-buffered) and raise the scoped limit past the
        # 16 MiB (v5e) / 32 MiB (v6e) defaults.
        per_buffer = 16 * 1024 * 1024
        vmem_limit = 80 * 1024 * 1024
    else:
        # v7x (64 MiB physical, 32 MiB scoped default) or unknown chip:
        # 8 MiB per input buffer (16 MiB double-buffered) fits the default.
        per_buffer = 8 * 1024 * 1024
        vmem_limit = None
    rows = max(_LANE, (per_buffer // bytes_per_row) // _LANE * _LANE)
    return rows, vmem_limit


def _pick_tile(B: int, block_rows, default_rows: int) -> int:
    rows = default_rows if block_rows is None else block_rows
    tb = min(rows, _round_up(B, _LANE))
    return _round_up(max(tb, _LANE), _LANE)


# ----------------------------------------------------------------------------
# Row-major path: x is (B, D) exactly like the PyTorch module's input.
# ----------------------------------------------------------------------------
def _logistic_risk_kernel(x_ref, w_ref, b_ref, o_ref):
    # x_ref: (TB, D) VMEM, w_ref: (1, D) VMEM, b_ref: (1,) SMEM, o_ref: (1, TB)
    x = x_ref[...]                                   # (TB, D) f32
    w = w_ref[...]                                   # (1, D) f32, row-broadcast
    bias = b_ref[0]                                  # scalar from SMEM
    # VPU multiply + XLU lane reduce; pad lanes 17..127 are masked by the
    # compiler for the logical-shape reduction.
    logits = jnp.sum(x * w, axis=-1) + bias          # (TB,)
    # NOTE: the (TB,) -> (1, TB) relayout costs an XLU transpose; it stays
    # hidden under DMA for this layout.  The feature-major kernel avoids it.
    o_ref[...] = jax.nn.sigmoid(logits)[None, :].astype(o_ref.dtype)


def logistic_risk_forward(x: jax.Array, w: jax.Array, b: jax.Array,
                          *, block_rows: int | None = None) -> jax.Array:
    """x: (B, D) f32, w: (1, D) f32, b: (1,) f32 -> (B, 1) = sigmoid(x @ w.T + b)."""
    B, D = x.shape
    # One x row lane-pads D=17 -> 128 lanes in VMEM: 512 B/row.
    max_rows, vmem_limit = _tile_policy(_LANE * 4)
    tb = _pick_tile(B, block_rows, max_rows)
    grid = pl.cdiv(B, tb)
    # Pad only the kernel-generated output slab (no copy of x is ever made).
    b_out = grid * tb

    out = pl.pallas_call(
        _logistic_risk_kernel,
        out_shape=jax.ShapeDtypeStruct((1, b_out), x.dtype),
        grid_spec=pltpu.PrefetchScalarGridSpec(
            num_scalar_prefetch=0,
            grid=(grid,),
            in_specs=[
                # x streams through double-buffered DMA; last block may be
                # partial (Pallas masks it; stray rows are sliced off below).
                pl.BlockSpec((tb, D), lambda i: (i, 0)),
                pl.BlockSpec((1, D), lambda i: (0, 0)),             # weights, resident
                pl.BlockSpec(memory_space=pltpu.MemorySpace.SMEM),  # bias scalar
            ],
            out_specs=pl.BlockSpec((1, tb), lambda i: (0, i)),      # lane-dense output
        ),
        compiler_params=pltpu.CompilerParams(
            dimension_semantics=("parallel",),
            vmem_limit_bytes=vmem_limit,
        ),
    )(x, w, b)

    return out[0, :B].reshape(B, 1)


# ----------------------------------------------------------------------------
# Feature-major fast path: for producers that can supply x already as (D, B).
# Batch lives on lanes -> contiguous DMA, ~5x smaller VMEM tiles, sublane
# reduce, and a natively lane-major result (no XLU relayout).
# ----------------------------------------------------------------------------
def _logistic_risk_kernel_fm(xt_ref, w_ref, b_ref, o_ref):
    # xt_ref: (D, TB) VMEM, w_ref: (D, 1) VMEM, b_ref: (1,) SMEM, o_ref: (1, TB)
    acc = jnp.sum(xt_ref[...] * w_ref[...], axis=0, keepdims=True) + b_ref[0]
    o_ref[...] = jax.nn.sigmoid(acc).astype(o_ref.dtype)


def logistic_risk_forward_feature_major(x_t: jax.Array, w: jax.Array, b: jax.Array,
                                        *, block_rows: int | None = None) -> jax.Array:
    """x_t: (D, B) f32 (same data as x, feature-major), w: (1, D), b: (1,) -> (B, 1)."""
    D, B = x_t.shape
    bytes_per_col = _round_up(D, 8) * 4              # sublane-padded column cost
    max_cols, vmem_limit = _tile_policy(bytes_per_col)
    tb = _pick_tile(B, block_rows, max_cols)
    grid = pl.cdiv(B, tb)
    b_out = grid * tb

    out = pl.pallas_call(
        _logistic_risk_kernel_fm,
        out_shape=jax.ShapeDtypeStruct((1, b_out), x_t.dtype),
        grid_spec=pltpu.PrefetchScalarGridSpec(
            num_scalar_prefetch=0,
            grid=(grid,),
            in_specs=[
                pl.BlockSpec((D, tb), lambda i: (0, i)),            # lane-dense x tile
                pl.BlockSpec((D, 1), lambda i: (0, 0)),             # weights (D,1), resident
                pl.BlockSpec(memory_space=pltpu.MemorySpace.SMEM),  # bias scalar
            ],
            out_specs=pl.BlockSpec((1, tb), lambda i: (0, i)),
        ),
        compiler_params=pltpu.CompilerParams(
            dimension_semantics=("parallel",),
            vmem_limit_bytes=vmem_limit,
        ),
    )(x_t, w.reshape(D, 1), b)

    return out[0, :B].reshape(B, 1)


if __name__ == "__main__":
    key = jax.random.PRNGKey(0)
    k_x, k_w, k_b = jax.random.split(key, 3)

    # Deterministic synthetic parameters (same shapes as nn.Linear(17, 1)).
    w = jax.random.normal(k_w, (1, INPUT_DIM), dtype=jnp.float32) * 0.1
    b = jax.random.normal(k_b, (1,), dtype=jnp.float32) * 0.1

    # 1) Small batch, default (generation-aware) tiling.
    batch = 8
    x = jax.random.normal(k_x, (batch, INPUT_DIM), dtype=jnp.float32)
    ref = jax.nn.sigmoid(x @ w.T + b)
    out = logistic_risk_forward(x, w, b)
    jax.block_until_ready(out)
    assert out.shape == (batch, 1)
    assert jnp.allclose(out, ref, atol=1e-5), "mismatch vs reference (small batch)"

    # 2) Multi-block grid with a partial last x block (no wrapper-side padding).
    batch2 = 300
    x2 = jax.random.normal(k_x, (batch2, INPUT_DIM), dtype=jnp.float32)
    ref2 = jax.nn.sigmoid(x2 @ w.T + b)
    out2 = logistic_risk_forward(x2, w, b, block_rows=128)
    jax.block_until_ready(out2)
    assert out2.shape == (batch2, 1)
    assert jnp.allclose(out2, ref2, atol=1e-5), "mismatch vs reference (partial block)"

    # 3) Feature-major fast path (transpose here is test-only; in production the
    #    producer supplies (D, B) directly so no extra HBM pass is paid).
    out3 = logistic_risk_forward_feature_major(x2.T, w, b, block_rows=128)
    jax.block_until_ready(out3)
    assert out3.shape == (batch2, 1)
    assert jnp.allclose(out3, ref2, atol=1e-5), "mismatch vs reference (feature-major)"

    print("KERNEL_OK")
</pallas_src>

<mosaic_0001>
module attributes {stable_mosaic.version = 11 : i64} {
  func.func @_logistic_risk_kernel(%arg0: i32, %arg1: memref<128x17xf32, #tpu.memory_space<vmem>>, %arg2: memref<1x17xf32, #tpu.memory_space<vmem>>, %arg3: memref<1xf32, #tpu.memory_space<smem>>, %arg4: memref<1x128xf32, #tpu.memory_space<vmem>>) attributes {dimension_semantics = [#tpu.dimension_semantics<parallel>], iteration_bounds = array<i64: 1>, scalar_prefetch = 0 : i64, scratch_operands = 0 : i64, tpu.core_type = #tpu.core_type<tc>, window_params = [{transform_indices = @transform_0, window_bounds = array<i64: 128, 17>}, {pipeline_mode = #tpu.pipeline_mode<synchronous>, transform_indices = @transform_1, window_bounds = array<i64: 1, 17>}, {transform_indices = @transform_2, window_bounds = array<i64: 1>}, {transform_indices = @transform_3, window_bounds = array<i64: 1, 128>}]} {
    %c0 = arith.constant 0 : index
    %c0_0 = arith.constant 0 : index
    %0 = vector.load %arg1[%c0, %c0_0] : memref<128x17xf32, #tpu.memory_space<vmem>>, vector<128x17xf32>
    %c0_1 = arith.constant 0 : index
    %c0_2 = arith.constant 0 : index
    %1 = vector.load %arg2[%c0_1, %c0_2] : memref<1x17xf32, #tpu.memory_space<vmem>>, vector<1x17xf32>
    %c0_3 = arith.constant 0 : index
    %2 = memref.load %arg3[%c0_3] : memref<1xf32, #tpu.memory_space<smem>>
    %3 = vector.broadcast %1 : vector<1x17xf32> to vector<128x17xf32>
    %4 = arith.mulf %0, %3 : vector<128x17xf32>
    %cst = arith.constant dense<0.000000e+00> : vector<128xf32>
    %5 = vector.multi_reduction <add>, %4, %cst [1] : vector<128x17xf32> to vector<128xf32>
    %6 = vector.broadcast %2 : f32 to vector<128xf32>
    %7 = arith.addf %5, %6 : vector<128xf32>
    %8 = arith.negf %7 : vector<128xf32>
    %9 = math.exp %8 : vector<128xf32>
    %cst_4 = arith.constant 1.000000e+00 : f32
    %10 = vector.broadcast %cst_4 : f32 to vector<128xf32>
    %11 = arith.addf %10, %9 : vector<128xf32>
    %12 = arith.divf %10, %11 : vector<128xf32>
    %13 = vector.shape_cast %12 : vector<128xf32> to vector<1x128xf32>
    %c0_5 = arith.constant 0 : index
    %c0_6 = arith.constant 0 : index
    %14 = vector.load %arg4[%c0_5, %c0_6] : memref<1x128xf32, #tpu.memory_space<vmem>>, vector<1x128xf32>
    tpu.vector_store %arg4[%c0_5, %c0_6], %13 {strides = array<i32>} : memref<1x128xf32, #tpu.memory_space<vmem>>, vector<1x128xf32>,
    return
  }
  func.func @transform_0(%arg0: i32) -> (i32, i32) {
    %c0_i32 = arith.constant 0 : i32
    %c0_i32_0 = arith.constant 0 : i32
    return %arg0, %c0_i32 : i32, i32
  }
  func.func @transform_1(%arg0: i32) -> (i32, i32) {
    %c0_i32 = arith.constant 0 : i32
    %c0_i32_0 = arith.constant 0 : i32
    %c0_i32_1 = arith.constant 0 : i32
    return %c0_i32, %c0_i32_0 : i32, i32
  }
  func.func @transform_2(%arg0: i32) -> i32 {
    %c0_i32 = arith.constant 0 : i32
    %c0_i32_0 = arith.constant 0 : i32
    return %c0_i32 : i32
  }
  func.func @transform_3(%arg0: i32) -> (i32, i32) {
    %c0_i32 = arith.constant 0 : i32
    %c0_i32_0 = arith.constant 0 : i32
    return %c0_i32, %arg0 : i32, i32
  }
}

</mosaic_0001>

<bundles_post_ra>
// kernel: tpu_custom_call.1
= control target key start
LH: loop header
LB: loop body
LE: loop exit
PB: predicated region body
PF: predicated region fallthrough
CT: control target
= control target key end

     0   :  { %9 = vsyncpa [#allocation4], 0  ;;  %s638_s0 = inlined_call_operand.hbm [shape: f32[8,17], index: 0, kind: input, shape index: {}]   ;;  %s639_s1 = inlined_call_operand.vmem [shape: f32[1,17], index: 1, kind: input, shape index: {}]   ;;  %s640_s2 = inlined_call_operand.<no memory space> [shape: f32[1], index: 2, kind: input, shape index: {}]   ;;  %s641_s3 = inlined_call_operand.hbm [shape: f32[1,128], index: 3, kind: output, shape index: {}]  }
   0x1   :  { %10 = vsyncpa [#allocation5], 0 }
   0x2   :  { %15 = vsyncadd [#allocation4], 1920  ;;  %s509_s12 = smov [#allocation3]   ;;  %s461_s16 = scalar_lea.hbm %s638_s0, 128 }
   0x3   :  { %s16_s13 = sshll.u32 %s509_s12, 4  ;;  %p462_p0 = scmp.ne.s32.totalorder %s638_s0, %s461_s16  ;;  %s17_s13 = int_to_ptr.vmem [resolvable:$true] %s16_s13 }
   0x4   :  { %p465_p1 = scmp.lt.u32.totalorder %s461_s16, %s638_s0 }
   0x6   :  { %p467_p2 = pnand %p465_p1, %p462_p0 }
   0x8   :  { %470 = shalt.err (!%p467_p2)
}
   0x9   :  { %s471_s21 = scalar_lea.vmem %s17_s13, 128  ;;  %s475_s22 = scalar_lea.vmem %s17_s13, 2048 }
   0xa   :  { %p472_p3 = scmp.ne.s32.totalorder %s17_s13, %s471_s21  ;;  %p476_p4 = scmp.lt.s32.totalorder %s17_s13, %s17_s13 }
   0xb   :  { %p477_p5 = scmp.lt.s32.totalorder %s475_s22, %s471_s21 }
   0xd   :  { %p478_p6 = por %p477_p5, %p476_p4 }
   0xf   :  { %p479_p7 = pnand %p478_p6, %p472_p3 }
  0x11   :  { %482 = shalt.err (!%p479_p7)
}
  0x12   :  { %s510_s23 = smov 128   ;;  %s511_s24 = smov 8  }
  0x13   :  { %22 = dma.hbm_to_vmem [thread:$0]  %s638_s0, 128, %s17_s13, [#allocation4], %s510_s23, %s510_s23, %s511_s24  }
  0x14   :  { %505 = dma.done.wait [#allocation4], 2048  }
  0x15   :  { %506 = vsyncadd [#allocation4], 4294965248  ;;  %v30_v0 = vld [vmem:[#allocation3] sm:$0xff]  ;;  %vm70_vm0 = vcmask 138240   ;;  %v32_v2 = vld [vmem:[#allocation3 + $0x10] sm:$0xff]  ;;  %v567_v49 = vstv %s640_s2  ;;  %vm259_vm1 = vcmask 130112  }
  0x16   :  { %v376_v1 = vld [vmem:[%s639_s1] ss:$0 sm:$0xff]  ;;  %v31_v5 = vld [vmem:[#allocation3 + $0x8] sm:$0xff]  ;;  %v33_v6 = vld [vmem:[#allocation3 + $0x18] sm:$0xff]  ;;  %vm266_vm2 = vcmask 195712   ;;  %vm273_vm3 = vcmask 261312  }
  0x17   :  { %v54_v3 = vmul.f32 %v376_v1, %v30_v0  ;;  %v56_v4 = vmul.f32 %v376_v1, %v32_v2  ;;  %v55_v7 = vmul.f32 %v376_v1, %v31_v5  ;;  %v57_v8 = vmul.f32 %v376_v1, %v33_v6  ;;  %v34_v9 = vld [vmem:[#allocation3 + $0x20] sm:$0xff]  ;;  %v35_v10 = vld [vmem:[#allocation3 + $0x28] sm:$0xff]  ;;  %v36_v17 = vld [vmem:[#allocation3 + $0x30] sm:$0xff]  ;;  %s512_s2 = smov [#allocation6]  }
  0x18   :  { %v58_v15 = vmul.f32 %v376_v1, %v34_v9  ;;  %v59_v16 = vmul.f32 %v376_v1, %v35_v10  ;;  %v37_v18 = vld [vmem:[#allocation3 + $0x38] sm:$0xff]  ;;  %v60_v21 = vmul.f32 %v376_v1, %v36_v17  ;;  %v38_v23 = vld [vmem:[#allocation3 + $0x40] sm:$0xff]  ;;  %v39_v24 = vld [vmem:[#allocation3 + $0x48] sm:$0xff]  ;;  %v248_v9 = vlaneseq  ;;  %s367_s29 = sshll.u32 %s512_s2, 4  ;;  %s368_s29 = int_to_ptr.vmem [resolvable:$true] %s367_s29 }
  0x19   :  { %v71_v11 = vsel %vm70_vm0, %v54_v3, 0.0  ;;  %v77_v12 = vsel %vm70_vm0, %v56_v4, 0.0  ;;  %v74_v13 = vsel %vm70_vm0, %v55_v7, 0.0  ;;  %v80_v14 = vsel %vm70_vm0, %v57_v8, 0.0  ;;  %v40_v29 = vld [vmem:[#allocation3 + $0x50] sm:$0xff]  ;;  %v41_v30 = vld [vmem:[#allocation3 + $0x58] sm:$0xff]  ;;  %p488_p9 = scmp.lt.s32.totalorder %s368_s29, %s368_s29 }
  0x1a   :  { %72 = vadd.xlane.f32.xlu0 %v71_v11  ;;  %78 = vadd.xlane.f32.xlu1 %v77_v12  ;;  %v83_v19 = vsel %vm70_vm0, %v58_v15, 0.0  ;;  %v86_v20 = vsel %vm70_vm0, %v59_v16, 0.0  ;;  %v61_v22 = vmul.f32 %v376_v1, %v37_v18  ;;  %v89_v25 = vsel %vm70_vm0, %v60_v21, 0.0  ;;  %v42_v35 = vld [vmem:[#allocation3 + $0x60] sm:$0xff]  ;;  %v43_v36 = vld [vmem:[#allocation3 + $0x68] sm:$0xff]  ;;  %v44_v41 = vld [vmem:[#allocation3 + $0x70] sm:$0xff] }
  0x1b   :  { %v62_v27 = vmul.f32 %v376_v1, %v38_v23  ;;  %v63_v28 = vmul.f32 %v376_v1, %v39_v24  ;;  %v64_v33 = vmul.f32 %v376_v1, %v40_v29  ;;  %v65_v34 = vmul.f32 %v376_v1, %v41_v30  ;;  %v45_v42 = vld [vmem:[#allocation3 + $0x78] sm:$0xff]  ;;  %s483_s30 = scalar_lea.vmem %s368_s29, 16  ;;  %s487_s4 = scalar_lea.vmem %s368_s29, 32 }
  0x1c   :  { %v92_v26 = vsel %vm70_vm0, %v61_v22, 0.0  ;;  %v66_v39 = vmul.f32 %v376_v1, %v42_v35  ;;  %v67_v40 = vmul.f32 %v376_v1, %v43_v36  ;;  %v68_v45 = vmul.f32 %v376_v1, %v44_v41  ;;  %p484_p8 = scmp.ne.s32.totalorder %s368_s29, %s483_s30  ;;  %p489_p10 = scmp.lt.s32.totalorder %s487_s4, %s483_s30 }
  0x1d   :  { %v95_v31 = vsel %vm70_vm0, %v62_v27, 0.0  ;;  %v98_v32 = vsel %vm70_vm0, %v63_v28, 0.0  ;;  %v101_v37 = vsel %vm70_vm0, %v64_v33, 0.0  ;;  %v104_v38 = vsel %vm70_vm0, %v65_v34, 0.0 }
  0x1e   :  { %75 = vadd.xlane.f32.xlu0 %v74_v13  ;;  %81 = vadd.xlane.f32.xlu1 %v80_v14  ;;  %v107_v43 = vsel %vm70_vm0, %v66_v39, 0.0  ;;  %v110_v44 = vsel %vm70_vm0, %v67_v40, 0.0  ;;  %v69_v46 = vmul.f32 %v376_v1, %v45_v42  ;;  %v113_v47 = vsel %vm70_vm0, %v68_v45, 0.0  ;;  %p490_p11 = por %p489_p10, %p488_p9 }
  0x1f   :  { %vm280_vm4 = vcmask 326912   ;;  %vm287_vm5 = vcmask 392512   ;;  %vm294_vm6 = vcmask 458112   ;;  %vm301_vm7 = vcmask 523712  }
  0x20   :  { %v116_v48 = vsel %vm70_vm0, %v69_v46, 0.0  ;;  %vm308_vm8 = vcmask 589312   ;;  %vm315_vm9 = vcmask 654912   ;;  %vm322_vm10 = vcmask 720512   ;;  %p491_p12 = pnand %p490_p11, %p484_p8 }
  0x21   :  { %vm329_vm11 = vcmask 786112   ;;  %vm336_vm12 = vcmask 851712   ;;  %vm343_vm13 = vcmask 917312   ;;  %vm350_vm14 = vcmask 982912  }
  0x22   :  { %84 = vadd.xlane.f32.xlu0 %v83_v19  ;;  %87 = vadd.xlane.f32.xlu1 %v86_v20  ;;  %v579_v20 = vand.u32 127, %v248_v9  ;;  %vm357_vm15 = vcmask 1048512  }
  0x24   :  { %v254_v35 = vadd.s32 4294967288, %v579_v20 }
  0x26   :  { %90 = vadd.xlane.f32.xlu0 %v89_v25  ;;  %93 = vadd.xlane.f32.xlu1 %v92_v26 }
  0x2a   :  { %96 = vadd.xlane.f32.xlu0 %v95_v31  ;;  %99 = vadd.xlane.f32.xlu1 %v98_v32  ;;  %v583_v31 = vshrl.u32 %v248_v9, 7  ;;  %v261_v32 = vadd.s32 4294967280, %v579_v20 }
  0x2c   :  { %v252_v45 = vsub.s32 %v579_v20, %v583_v31 }
  0x2e   :  { %102 = vadd.xlane.f32.xlu0 %v101_v37  ;;  %105 = vadd.xlane.f32.xlu1 %v104_v38 }
  0x32   :  { %108 = vadd.xlane.f32.xlu0 %v107_v43  ;;  %111 = vadd.xlane.f32.xlu1 %v110_v44  ;;  %v268_v43 = vadd.s32 4294967272, %v579_v20 }
  0x36   :  { %114 = vadd.xlane.f32.xlu0 %v113_v47  ;;  %117 = vadd.xlane.f32.xlu1 %v116_v48 }
  0xa7   :  { %v73_v50 = vpop.xlane.xlu0 %72  ;;  %v79_v51 = vpop.xlane.xlu1 %78 }
  0xa8   :  { %v120_v52 = vadd.f32 %v567_v49, %v73_v50  ;;  %v122_v53 = vadd.f32 %v567_v49, %v79_v51  ;;  %v264_v50 = vsub.s32 %v261_v32, %v583_v31  ;;  %v275_v51 = vadd.s32 4294967264, %v579_v20 }
  0xaa   :  { %v377_v54 = vmul.f32 -1.442695, %v120_v52  ;;  %v379_v55 = vmul.f32 -1.442695, %v122_v53 }
  0xab   :  { %v76_v56 = vpop.xlane.xlu0 %75  ;;  %v82_v57 = vpop.xlane.xlu1 %81 }
  0xac   :  { %397 = vpow2.f32 %v377_v54  ;;  %v121_v58 = vadd.f32 %v567_v49, %v76_v56  ;;  %v123_v59 = vadd.f32 %v567_v49, %v82_v57  ;;  %v257_v56 = vsub.s32 %v254_v35, %v583_v31 }
  0xad   :  { %399 = vpow2.f32 %v379_v55 }
  0xae   :  { %v378_v60 = vmul.f32 -1.442695, %v121_v58  ;;  %v380_v61 = vmul.f32 -1.442695, %v123_v59 }
  0xaf   :  { %v85_v62 = vpop.xlane.xlu0 %84  ;;  %v88_v63 = vpop.xlane.xlu1 %87 }
  0xb0   :  { %401 = vpow2.f32 %v378_v60  ;;  %v124_v0 = vadd.f32 %v567_v49, %v85_v62  ;;  %v125_v1 = vadd.f32 %v567_v49, %v88_v63  ;;  %v271_v60 = vsub.s32 %v268_v43, %v583_v31 }
  0xb1   :  { %403 = vpow2.f32 %v380_v61  ;;  %v282_v61 = vadd.s32 4294967256, %v579_v20 }
  0xb2   :  { %v381_v2 = vmul.f32 -1.442695, %v124_v0  ;;  %v382_v3 = vmul.f32 -1.442695, %v125_v1 }
  0xb3   :  { %v91_v4 = vpop.xlane.xlu0 %90  ;;  %v94_v5 = vpop.xlane.xlu1 %93 }
  0xb4   :  { %405 = vpow2.f32 %v381_v2  ;;  %v126_v6 = vadd.f32 %v567_v49, %v91_v4  ;;  %v127_v7 = vadd.f32 %v567_v49, %v94_v5  ;;  %v278_v2 = vsub.s32 %v275_v51, %v583_v31 }
  0xb5   :  { %407 = vpow2.f32 %v382_v3  ;;  %v331_v51 = vadd.s32 4294967200, %v579_v20 }
  0xb6   :  { %v398_v8 = vpop.eup %397  ;;  %v383_v10 = vmul.f32 -1.442695, %v126_v6  ;;  %v384_v13 = vmul.f32 -1.442695, %v127_v7  ;;  %v289_v7 = vadd.s32 4294967248, %v579_v20 }
  0xb7   :  { %v400_v11 = vpop.eup %399  ;;  %v184_v12 = vadd.f32 1.0, %v398_v8  ;;  %v97_v14 = vpop.xlane.xlu0 %96 }
  0xb8   :  { %v100_v15 = vpop.xlane.xlu1 %99  ;;  %v186_v16 = vadd.f32 1.0, %v400_v11  ;;  %409 = vpow2.f32 %v383_v10  ;;  %v128_v17 = vadd.f32 %v567_v49, %v97_v14  ;;  %v285_v11 = vsub.s32 %v282_v61, %v583_v31 }
  0xb9   :  { %v129_v18 = vadd.f32 %v567_v49, %v100_v15  ;;  %411 = vrcp.f32 %v184_v12  ;;  %v296_v14 = vadd.s32 4294967240, %v579_v20 }
  0xba   :  { %v402_v19 = vpop.eup %401  ;;  %413 = vrcp.f32 %v186_v16  ;;  %v385_v21 = vmul.f32 -1.442695, %v128_v17 }
  0xbb   :  { %v404_v22 = vpop.eup %403  ;;  %v185_v23 = vadd.f32 1.0, %v402_v19  ;;  %415 = vpow2.f32 %v384_v13  ;;  %v386_v24 = vmul.f32 -1.442695, %v129_v18  ;;  %v103_v25 = vpop.xlane.xlu0 %102  ;;  %v303_v18 = vadd.s32 4294967232, %v579_v20 }
  0xbc   :  { %v106_v26 = vpop.xlane.xlu1 %105  ;;  %v187_v27 = vadd.f32 1.0, %v404_v22  ;;  %417 = vpow2.f32 %v385_v21  ;;  %v130_v28 = vadd.f32 %v567_v49, %v103_v25 }
  0xbd   :  { %v131_v29 = vadd.f32 %v567_v49, %v106_v26  ;;  %419 = vrcp.f32 %v185_v23  ;;  %v292_v23 = vsub.s32 %v289_v7, %v583_v31  ;;  %v306_v32 = vsub.s32 %v303_v18, %v583_v31 }
  0xbe   :  { %v406_v30 = vpop.eup %405  ;;  %421 = vrcp.f32 %v187_v27  ;;  %v387_v33 = vmul.f32 -1.442695, %v130_v28  ;;  %v299_v27 = vsub.s32 %v296_v14, %v583_v31 }
  0xbf   :  { %v408_v34 = vpop.eup %407  ;;  %v188_v36 = vadd.f32 1.0, %v406_v30  ;;  %423 = vpow2.f32 %v386_v24  ;;  %v388_v37 = vmul.f32 -1.442695, %v131_v29  ;;  %v109_v38 = vpop.xlane.xlu0 %108 }
  0xc0   :  { %v112_v39 = vpop.xlane.xlu1 %111  ;;  %v189_v40 = vadd.f32 1.0, %v408_v34  ;;  %425 = vpow2.f32 %v387_v33  ;;  %v132_v41 = vadd.f32 %v567_v49, %v109_v38  ;;  %v310_v33 = vadd.s32 4294967224, %v579_v20 }
  0xc1   :  { %v133_v42 = vadd.f32 %v567_v49, %v112_v39  ;;  %427 = vrcp.f32 %v188_v36  ;;  %v317_v38 = vadd.s32 4294967216, %v579_v20 }
  0xc2   :  { %v410_v44 = vpop.eup %409  ;;  %429 = vrcp.f32 %v189_v40  ;;  %v389_v46 = vmul.f32 -1.442695, %v132_v41  ;;  %v324_v41 = vadd.s32 4294967208, %v579_v20 }
  0xc3   :  { %v390_v47 = vmul.f32 -1.442695, %v133_v42  ;;  %v412_v48 = vpop.eup %411  ;;  %v190_v52 = vadd.f32 1.0, %v410_v44  ;;  %431 = vpow2.f32 %v388_v37  ;;  %v115_v53 = vpop.xlane.xlu0 %114 }
  0xc4   :  { %v118_v54 = vpop.xlane.xlu1 %117  ;;  %v414_v55 = vpop.eup %413  ;;  %433 = vpow2.f32 %v389_v46  ;;  %v134_v57 = vadd.f32 %v567_v49, %v115_v53 }
  0xc5   :  { %v135_v58 = vadd.f32 %v567_v49, %v118_v54  ;;  %v416_v59 = vpop.eup %415  ;;  %435 = vrcp.f32 %v190_v52  ;;  %v253_v49 = vrot.slane %v412_v48, %v252_v45  ;;  %v265_v9 = vrot.slane %v414_v55, %v264_v50 }
  0xc6   :  { %v418_v62 = vpop.eup %417  ;;  %v191_v63 = vadd.f32 1.0, %v416_v59  ;;  %437 = vpow2.f32 %v390_v47  ;;  %v391_v0 = vmul.f32 -1.442695, %v134_v57  ;;  %v313_v45 = vsub.s32 %v310_v33, %v583_v31 }
  0xc7   :  { %v420_v1 = vpop.eup %419  ;;  %v192_v3 = vadd.f32 1.0, %v418_v62  ;;  %v392_v4 = vmul.f32 -1.442695, %v135_v58  ;;  %v320_v50 = vsub.s32 %v317_v38, %v583_v31  ;;  %v327_v55 = vsub.s32 %v324_v41, %v583_v31 }
  0xc8   :  { %v422_v5 = vpop.eup %421  ;;  %v258_v6 = vrot.slane %v420_v1, %v257_v56  ;;  %439 = vrcp.f32 %v191_v63  ;;  %v334_v63 = vsub.s32 %v331_v51, %v583_v31  ;;  %v345_v1 = vadd.s32 4294967184, %v579_v20 }
  0xc9   :  { %v424_v8 = vpop.eup %423  ;;  %v272_v10 = vrot.slane %v422_v5, %v271_v60  ;;  %441 = vrcp.f32 %v192_v3  ;;  %v338_v60 = vadd.s32 4294967192, %v579_v20 }
  0xca   :  { %v426_v12 = vpop.eup %425  ;;  %v260_v13 = vsel %vm259_vm1, %v258_v6, %v253_v49  ;;  %v193_v15 = vadd.f32 1.0, %v424_v8  ;;  %443 = vpow2.f32 %v391_v0  ;;  %v352_v49 = vadd.s32 4294967176, %v579_v20 }
  0xcb   :  { %v428_v16 = vpop.eup %427  ;;  %v267_v17 = vsel %vm266_vm2, %v265_v9, %v260_v13  ;;  %v194_v19 = vadd.f32 1.0, %v426_v12  ;;  %445 = vpow2.f32 %v392_v4  ;;  %v341_v5 = vsub.s32 %v338_v60, %v583_v31 }
  0xcc   :  { %v430_v21 = vpop.eup %429  ;;  %v279_v22 = vrot.slane %v428_v16, %v278_v2  ;;  %447 = vrcp.f32 %v193_v15  ;;  %v274_v25 = vsel %vm273_vm3, %v272_v10, %v267_v17  ;;  %v348_v9 = vsub.s32 %v345_v1, %v583_v31 }
  0xcd   :  { %v432_v24 = vpop.eup %431  ;;  %449 = vrcp.f32 %v194_v19  ;;  %v286_v30 = vrot.slane %v430_v21, %v285_v11  ;;  %v355_v12 = vsub.s32 %v352_v49, %v583_v31 }
  0xce   :  { %v434_v26 = vpop.eup %433  ;;  %v195_v28 = vadd.f32 1.0, %v432_v24  ;;  %v281_v36 = vsel %vm280_vm4, %v279_v22, %v274_v25 }
  0xcf   :  { %v436_v29 = vpop.eup %435  ;;  %v196_v34 = vadd.f32 1.0, %v434_v26  ;;  %v288_v43 = vsel %vm287_vm5, %v286_v30, %v281_v36 }
  0xd0   :  { %v438_v35 = vpop.eup %437  ;;  %v293_v37 = vrot.slane %v436_v29, %v292_v23  ;;  %451 = vrcp.f32 %v195_v28 }
  0xd1   :  { %453 = vrcp.f32 %v196_v34  ;;  %v197_v39 = vadd.f32 1.0, %v438_v35 }
  0xd2   :  { %v440_v40 = vpop.eup %439  ;;  %v295_v47 = vsel %vm294_vm6, %v293_v37, %v288_v43 }
  0xd3   :  { %v442_v42 = vpop.eup %441  ;;  %v300_v44 = vrot.slane %v440_v40, %v299_v27  ;;  %455 = vrcp.f32 %v197_v39 }
  0xd4   :  { %v444_v46 = vpop.eup %443  ;;  %v307_v48 = vrot.slane %v442_v42, %v306_v32 }
  0xd5   :  { %v446_v52 = vpop.eup %445  ;;  %v198_v53 = vadd.f32 1.0, %v444_v46  ;;  %v302_v58 = vsel %vm301_vm7, %v300_v44, %v295_v47 }
  0xd6   :  { %v448_v54 = vpop.eup %447  ;;  %v199_v56 = vadd.f32 1.0, %v446_v52  ;;  %v309_v62 = vsel %vm308_vm8, %v307_v48, %v302_v58 }
  0xd7   :  { %v450_v57 = vpop.eup %449  ;;  %v314_v59 = vrot.slane %v448_v54, %v313_v45  ;;  %457 = vrcp.f32 %v198_v53 }
  0xd8   :  { %v321_v61 = vrot.slane %v450_v57, %v320_v50  ;;  %459 = vrcp.f32 %v199_v56 }
  0xd9   :  { %v316_v4 = vsel %vm315_vm9, %v314_v59, %v309_v62 }
  0xda   :  { %v452_v0 = vpop.eup %451  ;;  %v323_v6 = vsel %vm322_vm10, %v321_v61, %v316_v4 }
  0xdb   :  { %v454_v2 = vpop.eup %453  ;;  %v328_v3 = vrot.slane %v452_v0, %v327_v55 }
  0xdc   :  { %v335_v7 = vrot.slane %v454_v2, %v334_v63 }
  0xdd   :  { %v456_v8 = vpop.eup %455  ;;  %v330_v10 = vsel %vm329_vm11, %v328_v3, %v323_v6 }
  0xde   :  { %v342_v11 = vrot.slane %v456_v8, %v341_v5  ;;  %v337_v13 = vsel %vm336_vm12, %v335_v7, %v330_v10 }
  0xe0   :  { %v344_v20 = vsel %vm343_vm13, %v342_v11, %v337_v13 }
  0xe1   :  { %v458_v14 = vpop.eup %457 }
  0xe2   :  { %v460_v15 = vpop.eup %459  ;;  %v349_v16 = vrot.slane %v458_v14, %v348_v9 }
  0xe3   :  { %v356_v17 = vrot.slane %v460_v15, %v355_v12 }
  0xe4   :  { %v351_v18 = vsel %vm350_vm14, %v349_v16, %v344_v20 }
  0xe5   :  { %v358_v19 = vsel %vm357_vm15, %v356_v17, %v351_v18 }
  0xe6   :  { %360 = vst [vmem:[#allocation6] sm:$0x1] %v358_v19 }
  0xe7   :  { %494 = shalt.err (!%p491_p12)
}
  0xe8   :  { %s495_s7 = scalar_lea.hbm %s641_s3, 16 }
  0xe9   :  { %p496_p13 = scmp.ne.s32.totalorder %s641_s3, %s495_s7  ;;  %p499_p0 = scmp.lt.u32.totalorder %s495_s7, %s641_s3 }
  0xeb   :  { %p501_p1 = pnand %p499_p0, %p496_p13 }
  0xed   :  { %504 = shalt.err (!%p501_p1)
}
  0xee   :  { %370 = dma.vmem_to_hbm [thread:$0]  %s368_s29, 16, %s641_s3, [#allocation5]  }
  0xef   :  { %507 = dma.done.wait [#allocation5], 16  }
  0xf0   :  { %508 = vsyncadd [#allocation5], 4294967280 }
  0xf1   :  { %374 = vsyncpa [#allocation4], 1 }
  0xf2   :  { %375 = vsyncpa [#allocation5], 1 }

</bundles_post_ra>
